<compile_context>
chip_gen: v5e
topology: v5e:2x2
jax: 0.10.0
libtpu: 0.0.40
codegen_flags: <defaults>
</compile_context>

<pallas_src>
import functools

import jax
import jax.numpy as jnp
from jax.experimental import pallas as pl
from jax.experimental.pallas import tpu as pltpu


def _round_up(x, m):
    return ((x + m - 1) // m) * m


def _plan_batch(B, *, max_tb=2048, lane=128, small=512):
    """Pick (tb, b_pad, n_steps) for the lane-dense batch axis.

    - B < small: one full-extent block (no lane constraint, zero padding);
      at this size the kernel is per-step-overhead bound and a second grid
      step would cost more than a second v7x TensorCore saves.
    - otherwise: >= 2 steps (kept even so both v7x TCs get equal work),
      tile capped near 2048 rows, rounded up to the 128-lane hard floor
      (v5e MXU-native; 256-multiples for v6e/v7x fall out for most B) --
      this minimizes padding waste versus a hard 256 cap.
    """
    if B < small:
        return B, B, 1
    n = max(2, pl.cdiv(B, max_tb))
    if n % 2:
        n += 1
    tb = _round_up(pl.cdiv(B, n), lane)
    return tb, tb * n, n


def mlp_kernel(x_ref, w1_ref, b1_ref, w2_ref, b2_ref, w3_ref, b3_ref, o_ref):
    # All tensors are "transposed": [features, batch].
    xT = x_ref[...]                       # (K, TB)  f32, K = input_dims (4)
    w1 = w1_ref[...]                      # (H, K)   f32  (PyTorch [out, in])
    H = w1.shape[0]
    tb = xT.shape[1]

    # ---- fc1 + ReLU: tiny K=4 contraction on the VPU as unrolled
    # broadcast-FMAs (exact f32; MXU would be a nearly-empty pass).
    h1 = jnp.broadcast_to(b1_ref[...], (H, tb))          # (H, TB)
    for k in range(xT.shape[0]):                          # static unroll, K small
        h1 = h1 + w1[:, k:k + 1] * xT[k:k + 1, :]
    h1 = jnp.maximum(h1, 0.0)

    # ---- fc2 + ReLU: the real (H x H) matmul.  bf16 operands on the MXU,
    # f32 accumulation; bias-add / ReLU stay f32 (v5e VPU has no bf16 path).
    h2 = jnp.dot(w2_ref[...], h1.astype(jnp.bfloat16),
                 preferred_element_type=jnp.float32)       # (H, TB) f32
    h2 = jnp.maximum(h2 + b2_ref[...], 0.0)

    # ---- fc3 (no activation): bf16 operands, f32 accumulate.  Output rows
    # are padded 2 -> 8 (sublane alignment) so the store is lane-dense along
    # batch with only 4x write amplification (vs 64x for a 128-lane pad).
    out = jnp.dot(w3_ref[...], h2.astype(jnp.bfloat16),
                  preferred_element_type=jnp.float32)      # (8, TB) f32
    o_ref[...] = (out + b3_ref[...]).astype(o_ref.dtype)


def prepare_params(w1, b1, w2, b2, w3, b3, *, out_row_pad=8):
    """One-time (per weight update) prep hoisted out of the per-call path:
    bf16 casts for the MXU layers and the fc3 sublane pad.  Weights keep the
    PyTorch [out, in] layout; biases become [out, 1] columns."""
    H = w1.shape[0]
    out_dims = w3.shape[0]
    op = _round_up(max(out_dims, out_row_pad), out_row_pad)
    w3p = jnp.pad(w3, ((0, op - out_dims), (0, 0))).astype(jnp.bfloat16)
    b3p = jnp.pad(b3.reshape(out_dims, 1), ((0, op - out_dims), (0, 0)))
    return (w1.astype(jnp.float32),
            b1.reshape(H, 1).astype(jnp.float32),
            w2.astype(jnp.bfloat16),
            b2.reshape(H, 1).astype(jnp.float32),
            w3p,
            b3p.astype(jnp.float32))


def _mlp_forward_impl(x, params, *, out_dims):
    w1, b1, w2, b2, w3p, b3p = params
    B, K = x.shape
    tb, b_pad, n_steps = _plan_batch(B)

    # Layout plumbing (transpose + lane pad) fuses under jit with the kernel.
    xT = x.T                                              # (K, B)
    if b_pad != B:
        xT = jnp.pad(xT, ((0, 0), (0, b_pad - B)))

    out_rows = w3p.shape[0]                               # 8 (padded fc3 rows)

    def resident(a):
        # Same block index every grid step -> stays resident in VMEM.
        return pl.BlockSpec(a.shape, lambda i: (0, 0))

    outT = pl.pallas_call(
        mlp_kernel,
        out_shape=jax.ShapeDtypeStruct((out_rows, b_pad), jnp.float32),
        grid=(n_steps,),
        in_specs=[
            pl.BlockSpec((K, tb), lambda i: (0, i)),      # x^T: pipelined
            resident(w1), resident(b1),
            resident(w2), resident(b2),
            resident(w3p), resident(b3p),
        ],
        out_specs=pl.BlockSpec((out_rows, tb), lambda i: (0, i)),
        compiler_params=pltpu.CompilerParams(
            dimension_semantics=("parallel",)),           # 2 TCs on v7x
    )(xT, w1, b1, w2, b2, w3p, b3p)

    return outT[:out_dims, :B].T


mlp_forward = jax.jit(_mlp_forward_impl, static_argnames=("out_dims",))


def init_linear(key, in_dim, out_dim):
    # Mimic PyTorch nn.Linear default init: U(-1/sqrt(in), 1/sqrt(in)),
    # weight stored [out, in], bias [out].
    kw, kb = jax.random.split(key)
    bound = 1.0 / (in_dim ** 0.5)
    w = jax.random.uniform(kw, (out_dim, in_dim), jnp.float32, -bound, bound)
    b = jax.random.uniform(kb, (out_dim,), jnp.float32, -bound, bound)
    return w, b


def _reference(x, w1, b1, w2, b2, w3, b3):
    h1 = jnp.maximum(x @ w1.T + b1, 0.0)
    h2 = jnp.maximum(h1 @ w2.T + b2, 0.0)
    return h2 @ w3.T + b3


if __name__ == "__main__":
    # CartPole-ish dims: obs=4, actions=2, hidden=128.
    input_dims, output_dims, hidden = 4, 2, 128

    key = jax.random.PRNGKey(0)
    k1, k2, k3, kxa, kxb = jax.random.split(key, 5)

    w1, b1 = init_linear(k1, input_dims, hidden)
    w2, b2 = init_linear(k2, hidden, hidden)
    w3, b3 = init_linear(k3, hidden, output_dims)
    params = prepare_params(w1, b1, w2, b2, w3, b3)

    # Small CartPole-style batch: single full-extent block, zero padding.
    x_small = jax.random.normal(kxa, (8, input_dims), jnp.float32)
    out_small = jax.block_until_ready(
        mlp_forward(x_small, params, out_dims=output_dims))
    ref_small = _reference(x_small, w1, b1, w2, b2, w3, b3)
    assert out_small.shape == (8, output_dims)
    # bf16 MXU operands in fc2/fc3 -> tolerance looser than pure-f32.
    assert jnp.allclose(out_small, ref_small, atol=2e-2, rtol=2e-2)

    # Larger, non-multiple batch: exercises the 2-step grid (v7x megacore)
    # and the lane-padding path (tb=384, b_pad=768).
    x_big = jax.random.normal(kxb, (600, input_dims), jnp.float32)
    out_big = jax.block_until_ready(
        mlp_forward(x_big, params, out_dims=output_dims))
    ref_big = _reference(x_big, w1, b1, w2, b2, w3, b3)
    assert out_big.shape == (600, output_dims)
    assert jnp.allclose(out_big, ref_big, atol=2e-2, rtol=2e-2)

    print("KERNEL_OK")
</pallas_src>

<mosaic_0001>
module attributes {stable_mosaic.version = 11 : i64} {
  func.func @mlp_kernel(%arg0: i32, %arg1: memref<4x8xf32, #tpu.memory_space<vmem>>, %arg2: memref<128x4xf32, #tpu.memory_space<vmem>>, %arg3: memref<128x1xf32, #tpu.memory_space<vmem>>, %arg4: memref<128x128xbf16, #tpu.memory_space<vmem>>, %arg5: memref<128x1xf32, #tpu.memory_space<vmem>>, %arg6: memref<8x128xbf16, #tpu.memory_space<vmem>>, %arg7: memref<8x1xf32, #tpu.memory_space<vmem>>, %arg8: memref<8x8xf32, #tpu.memory_space<vmem>>) attributes {dimension_semantics = [#tpu.dimension_semantics<parallel>], iteration_bounds = array<i64: 1>, scalar_prefetch = 0 : i64, scratch_operands = 0 : i64, tpu.core_type = #tpu.core_type<tc>, window_params = [{transform_indices = @transform_0, window_bounds = array<i64: 4, 8>}, {pipeline_mode = #tpu.pipeline_mode<synchronous>, transform_indices = @transform_1, window_bounds = array<i64: 128, 4>}, {pipeline_mode = #tpu.pipeline_mode<synchronous>, transform_indices = @transform_2, window_bounds = array<i64: 128, 1>}, {pipeline_mode = #tpu.pipeline_mode<synchronous>, transform_indices = @transform_3, window_bounds = array<i64: 128, 128>}, {pipeline_mode = #tpu.pipeline_mode<synchronous>, transform_indices = @transform_4, window_bounds = array<i64: 128, 1>}, {pipeline_mode = #tpu.pipeline_mode<synchronous>, transform_indices = @transform_5, window_bounds = array<i64: 8, 128>}, {pipeline_mode = #tpu.pipeline_mode<synchronous>, transform_indices = @transform_6, window_bounds = array<i64: 8, 1>}, {transform_indices = @transform_7, window_bounds = array<i64: 8, 8>}]} {
    %c0 = arith.constant 0 : index
    %c0_0 = arith.constant 0 : index
    %0 = vector.load %arg1[%c0, %c0_0] : memref<4x8xf32, #tpu.memory_space<vmem>>, vector<4x8xf32>
    %c0_1 = arith.constant 0 : index
    %c0_2 = arith.constant 0 : index
    %1 = vector.load %arg2[%c0_1, %c0_2] : memref<128x4xf32, #tpu.memory_space<vmem>>, vector<128x4xf32>
    %c0_3 = arith.constant 0 : index
    %c0_4 = arith.constant 0 : index
    %2 = vector.load %arg3[%c0_3, %c0_4] : memref<128x1xf32, #tpu.memory_space<vmem>>, vector<128x1xf32>
    %3 = vector.shape_cast %2 : vector<128x1xf32> to vector<128x1xf32>
    %4 = vector.broadcast %3 : vector<128x1xf32> to vector<128x8xf32>
    %5 = vector.extract_strided_slice %1 {offsets = [0, 0], sizes = [128, 1], strides = [1, 1]} : vector<128x4xf32> to vector<128x1xf32>
    %6 = vector.extract_strided_slice %0 {offsets = [0, 0], sizes = [1, 8], strides = [1, 1]} : vector<4x8xf32> to vector<1x8xf32>
    %7 = vector.broadcast %5 : vector<128x1xf32> to vector<128x8xf32>
    %8 = vector.broadcast %6 : vector<1x8xf32> to vector<128x8xf32>
    %9 = arith.mulf %7, %8 : vector<128x8xf32>
    %10 = arith.addf %4, %9 : vector<128x8xf32>
    %11 = vector.extract_strided_slice %1 {offsets = [0, 1], sizes = [128, 1], strides = [1, 1]} : vector<128x4xf32> to vector<128x1xf32>
    %12 = vector.extract_strided_slice %0 {offsets = [1, 0], sizes = [1, 8], strides = [1, 1]} : vector<4x8xf32> to vector<1x8xf32>
    %13 = vector.broadcast %11 : vector<128x1xf32> to vector<128x8xf32>
    %14 = vector.broadcast %12 : vector<1x8xf32> to vector<128x8xf32>
    %15 = arith.mulf %13, %14 : vector<128x8xf32>
    %16 = arith.addf %10, %15 : vector<128x8xf32>
    %17 = vector.extract_strided_slice %1 {offsets = [0, 2], sizes = [128, 1], strides = [1, 1]} : vector<128x4xf32> to vector<128x1xf32>
    %18 = vector.extract_strided_slice %0 {offsets = [2, 0], sizes = [1, 8], strides = [1, 1]} : vector<4x8xf32> to vector<1x8xf32>
    %19 = vector.broadcast %17 : vector<128x1xf32> to vector<128x8xf32>
    %20 = vector.broadcast %18 : vector<1x8xf32> to vector<128x8xf32>
    %21 = arith.mulf %19, %20 : vector<128x8xf32>
    %22 = arith.addf %16, %21 : vector<128x8xf32>
    %23 = vector.extract_strided_slice %1 {offsets = [0, 3], sizes = [128, 1], strides = [1, 1]} : vector<128x4xf32> to vector<128x1xf32>
    %24 = vector.extract_strided_slice %0 {offsets = [3, 0], sizes = [1, 8], strides = [1, 1]} : vector<4x8xf32> to vector<1x8xf32>
    %25 = vector.broadcast %23 : vector<128x1xf32> to vector<128x8xf32>
    %26 = vector.broadcast %24 : vector<1x8xf32> to vector<128x8xf32>
    %27 = arith.mulf %25, %26 : vector<128x8xf32>
    %28 = arith.addf %22, %27 : vector<128x8xf32>
    %cst = arith.constant 0.000000e+00 : f32
    %29 = vector.broadcast %cst : f32 to vector<128x8xf32>
    %30 = arith.maximumf %28, %29 : vector<128x8xf32>
    %c0_5 = arith.constant 0 : index
    %c0_6 = arith.constant 0 : index
    %31 = vector.load %arg4[%c0_5, %c0_6] : memref<128x128xbf16, #tpu.memory_space<vmem>>, vector<128x128xbf16>
    %32 = arith.truncf %30 : vector<128x8xf32> to vector<128x8xbf16>
    %cst_7 = arith.constant dense<0.000000e+00> : vector<128x8xf32>
    %33 = tpu.matmul %31, %32, %cst_7 {dimension_numbers = #tpu.dot_dimension_numbers<[1], [0], [0], [1], [0, 0, 1, 1], [], []>} : vector<128x128xbf16>, vector<128x8xbf16>, vector<128x8xf32> -> vector<128x8xf32>
    %c0_8 = arith.constant 0 : index
    %c0_9 = arith.constant 0 : index
    %34 = vector.load %arg5[%c0_8, %c0_9] : memref<128x1xf32, #tpu.memory_space<vmem>>, vector<128x1xf32>
    %35 = vector.broadcast %34 : vector<128x1xf32> to vector<128x8xf32>
    %36 = arith.addf %33, %35 : vector<128x8xf32>
    %cst_10 = arith.constant 0.000000e+00 : f32
    %37 = vector.broadcast %cst_10 : f32 to vector<128x8xf32>
    %38 = arith.maximumf %36, %37 : vector<128x8xf32>
    %c0_11 = arith.constant 0 : index
    %c0_12 = arith.constant 0 : index
    %39 = vector.load %arg6[%c0_11, %c0_12] : memref<8x128xbf16, #tpu.memory_space<vmem>>, vector<8x128xbf16>
    %40 = arith.truncf %38 : vector<128x8xf32> to vector<128x8xbf16>
    %cst_13 = arith.constant dense<0.000000e+00> : vector<8x8xf32>
    %41 = tpu.matmul %39, %40, %cst_13 {dimension_numbers = #tpu.dot_dimension_numbers<[1], [0], [0], [1], [0, 0, 1, 1], [], []>} : vector<8x128xbf16>, vector<128x8xbf16>, vector<8x8xf32> -> vector<8x8xf32>
    %c0_14 = arith.constant 0 : index
    %c0_15 = arith.constant 0 : index
    %42 = vector.load %arg7[%c0_14, %c0_15] : memref<8x1xf32, #tpu.memory_space<vmem>>, vector<8x1xf32>
    %43 = vector.broadcast %42 : vector<8x1xf32> to vector<8x8xf32>
    %44 = arith.addf %41, %43 : vector<8x8xf32>
    %c0_16 = arith.constant 0 : index
    %c0_17 = arith.constant 0 : index
    %45 = vector.load %arg8[%c0_16, %c0_17] : memref<8x8xf32, #tpu.memory_space<vmem>>, vector<8x8xf32>
    tpu.vector_store %arg8[%c0_16, %c0_17], %44 {strides = array<i32>} : memref<8x8xf32, #tpu.memory_space<vmem>>, vector<8x8xf32>,
    return
  }
  func.func @transform_0(%arg0: i32) -> (i32, i32) {
    %c0_i32 = arith.constant 0 : i32
    %c0_i32_0 = arith.constant 0 : i32
    return %c0_i32, %arg0 : i32, i32
  }
  func.func @transform_1(%arg0: i32) -> (i32, i32) {
    %c0_i32 = arith.constant 0 : i32
    %c0_i32_0 = arith.constant 0 : i32
    %c0_i32_1 = arith.constant 0 : i32
    return %c0_i32, %c0_i32_0 : i32, i32
  }
  func.func @transform_2(%arg0: i32) -> (i32, i32) {
    %c0_i32 = arith.constant 0 : i32
    %c0_i32_0 = arith.constant 0 : i32
    %c0_i32_1 = arith.constant 0 : i32
    return %c0_i32, %c0_i32_0 : i32, i32
  }
  func.func @transform_3(%arg0: i32) -> (i32, i32) {
    %c0_i32 = arith.constant 0 : i32
    %c0_i32_0 = arith.constant 0 : i32
    %c0_i32_1 = arith.constant 0 : i32
    return %c0_i32, %c0_i32_0 : i32, i32
  }
  func.func @transform_4(%arg0: i32) -> (i32, i32) {
    %c0_i32 = arith.constant 0 : i32
    %c0_i32_0 = arith.constant 0 : i32
    %c0_i32_1 = arith.constant 0 : i32
    return %c0_i32, %c0_i32_0 : i32, i32
  }
  func.func @transform_5(%arg0: i32) -> (i32, i32) {
    %c0_i32 = arith.constant 0 : i32
    %c0_i32_0 = arith.constant 0 : i32
    %c0_i32_1 = arith.constant 0 : i32
    return %c0_i32, %c0_i32_0 : i32, i32
  }
  func.func @transform_6(%arg0: i32) -> (i32, i32) {
    %c0_i32 = arith.constant 0 : i32
    %c0_i32_0 = arith.constant 0 : i32
    %c0_i32_1 = arith.constant 0 : i32
    return %c0_i32, %c0_i32_0 : i32, i32
  }
  func.func @transform_7(%arg0: i32) -> (i32, i32) {
    %c0_i32 = arith.constant 0 : i32
    %c0_i32_0 = arith.constant 0 : i32
    return %c0_i32, %arg0 : i32, i32
  }
}

</mosaic_0001>

<bundles_post_ra>
// kernel: _mlp_forward_impl.1
= control target key start
LH: loop header
LB: loop body
LE: loop exit
PB: predicated region body
PF: predicated region fallthrough
CT: control target
= control target key end

     0   :  { %v936_v0 = vmov 0   ;;  %v937_v29 = vmov 1   ;;  %v938_v32 = vmov 2   ;;  %v939_v36 = vmov 3   ;;  %s1426_s2 = inlined_call_operand.vmem [shape: f32[128,1], index: 2, kind: input, shape index: {}]   ;;  %s1427_s1 = inlined_call_operand.vmem [shape: f32[128,4], index: 1, kind: input, shape index: {}]   ;;  %s1428_s0 = inlined_call_operand.vmem [shape: f32[4,8], index: 0, kind: input, shape index: {}]   ;;  %s1429_s4 = inlined_call_operand.vmem [shape: f32[128,1], index: 4, kind: input, shape index: {}]   ;;  %s1430_s3 = inlined_call_operand.vmem [shape: bf16[128,128], index: 3, kind: input, shape index: {}]   ;;  %s1431_s6 = inlined_call_operand.vmem [shape: f32[8,1], index: 6, kind: input, shape index: {}]   ;;  %s1432_s5 = inlined_call_operand.vmem [shape: bf16[8,128], index: 5, kind: input, shape index: {}]   ;;  %s1433_s7 = inlined_call_operand.vmem [shape: f32[8,8], index: 7, kind: output, shape index: {}]  }
   0x1   :  { %888 = vset.pattern.permute.xlu2 %v936_v0  ;;  %887 = vset.pattern.permute.xlu1 %v936_v0  ;;  %v47_v1 = vld [vmem:[%s1426_s2 + $0x20] sm:$0xff]  ;;  %v45_v2 = vld [vmem:[%s1426_s2 + $0x10] sm:$0xff]  ;;  %v48_v4 = vld [vmem:[%s1426_s2 + $0x28] sm:$0xff]  ;;  %vm820_vm0 = vcmask 64512  }
   0x2   :  { %v43_v3 = vld [vmem:[%s1426_s2] sm:$0xff]  ;;  %886 = vset.pattern.permute.xlu0 %v936_v0  ;;  %81 = vperm.xlu2 %888, %v47_v1   ;;  %v46_v5 = vld [vmem:[%s1426_s2 + $0x18] sm:$0xff]  ;;  %v44_v6 = vld [vmem:[%s1426_s2 + $0x8] sm:$0xff] }
   0x3   :  { %71 = vperm.xlu1 %887, %v45_v2   ;;  %61 = vperm.xlu0 %886, %v43_v3   ;;  %v51_v7 = vld [vmem:[%s1426_s2 + $0x40] sm:$0xff]  ;;  %v50_v8 = vld [vmem:[%s1426_s2 + $0x38] sm:$0xff]  ;;  %v49_v9 = vld [vmem:[%s1426_s2 + $0x30] sm:$0xff] }
   0x4   :  { %v54_v10 = vld [vmem:[%s1426_s2 + $0x58] sm:$0xff]  ;;  %v53_v11 = vld [vmem:[%s1426_s2 + $0x50] sm:$0xff]  ;;  %v52_v12 = vld [vmem:[%s1426_s2 + $0x48] sm:$0xff] }
   0x5   :  { %v57_v13 = vld [vmem:[%s1426_s2 + $0x70] sm:$0xff]  ;;  %v56_v14 = vld [vmem:[%s1426_s2 + $0x68] sm:$0xff]  ;;  %v55_v15 = vld [vmem:[%s1426_s2 + $0x60] sm:$0xff] }
   0x6   :  { %v1031_v16 = vld [vmem:[%s1427_s1 + $0x8] sm:$0xff]  ;;  %v58_v17 = vld [vmem:[%s1426_s2 + $0x78] sm:$0xff]  ;;  %v1039_v18 = vld [vmem:[%s1427_s1] sm:$0xff] }
   0x7   :  { %v1046_v19 = vld [vmem:[%s1427_s1 + $0x20] sm:$0xff]  ;;  %v1051_v20 = vld [vmem:[%s1427_s1 + $0x10] sm:$0xff]  ;;  %v1056_v21 = vld [vmem:[%s1427_s1 + $0x18] sm:$0xff] }
   0x8   :  { %v1064_v22 = vld [vmem:[%s1427_s1 + $0x38] sm:$0xff]  ;;  %v1069_v23 = vld [vmem:[%s1427_s1 + $0x28] sm:$0xff]  ;;  %v1074_v24 = vld [vmem:[%s1427_s1 + $0x30] sm:$0xff] }
   0x9   :  { %v41_v25 = vld [vmem:[%s1427_s1 + $0x70] sm:$0xff]  ;;  %v1085_v26 = vld [vmem:[%s1427_s1 + $0x40] sm:$0xff]  ;;  %v1090_v27 = vld [vmem:[%s1427_s1 + $0x48] sm:$0xff] }
   0xa   :  { %86 = vperm.xlu2 %888, %v48_v4   ;;  %v42_v28 = vld [vmem:[%s1427_s1 + $0x78] sm:$0xff]  ;;  %v39_v30 = vld [vmem:[%s1427_s1 + $0x60] sm:$0xff]  ;;  %v40_v31 = vld [vmem:[%s1427_s1 + $0x68] sm:$0xff] }
   0xb   :  { %76 = vperm.xlu1 %887, %v46_v5   ;;  %66 = vperm.xlu0 %886, %v44_v6   ;;  %v37_v33 = vld [vmem:[%s1427_s1 + $0x50] sm:$0xff]  ;;  %v38_v35 = vld [vmem:[%s1427_s1 + $0x58] sm:$0xff]  ;;  %v1138_v45 = vld [vmem:[%s1428_s0] sm:$0xf] }
   0xc   :  { %v1143_v46 = vperm.slane %v1138_v45, 0 }
  0x12   :  { %101 = vperm.xlu2 %888, %v51_v7  }
  0x13   :  { %96 = vperm.xlu1 %887, %v50_v8   ;;  %91 = vperm.xlu0 %886, %v49_v9  }
  0x1a   :  { %116 = vperm.xlu2 %888, %v54_v10  }
  0x1b   :  { %111 = vperm.xlu1 %887, %v53_v11   ;;  %106 = vperm.xlu0 %886, %v52_v12  }
  0x22   :  { %131 = vperm.xlu2 %888, %v57_v13  }
  0x23   :  { %126 = vperm.xlu1 %887, %v56_v14   ;;  %121 = vperm.xlu0 %886, %v55_v15  }
  0x2a   :  { %146 = vperm.xlu2 %888, %v1031_v16  }
  0x2b   :  { %136 = vperm.xlu0 %886, %v58_v17   ;;  %141 = vperm.xlu1 %887, %v1039_v18  }
  0x32   :  { %161 = vperm.xlu2 %888, %v1046_v19  }
  0x33   :  { %151 = vperm.xlu0 %886, %v1051_v20   ;;  %156 = vperm.xlu1 %887, %v1056_v21  }
  0x3a   :  { %176 = vperm.xlu2 %888, %v1064_v22  }
  0x3b   :  { %166 = vperm.xlu0 %886, %v1069_v23   ;;  %171 = vperm.xlu1 %887, %v1074_v24  }
  0x42   :  { %211 = vperm.xlu2 %888, %v41_v25  }
  0x43   :  { %181 = vperm.xlu0 %886, %v1085_v26   ;;  %186 = vperm.xlu1 %887, %v1090_v27  }
  0x4a   :  { %890 = vset.pattern.permute.xlu2 %v937_v29 }
  0x4b   :  { %216 = vperm.xlu0 %886, %v42_v28   ;;  %889 = vset.pattern.permute.xlu1 %v937_v29 }
  0x4c   :  { %313 = vperm.xlu2 %890, %v42_v28   ;;  %309 = vperm.xlu1 %889, %v41_v25  }
  0x53   :  { %201 = vperm.xlu0 %886, %v39_v30  }
  0x54   :  { %892 = vset.pattern.permute.xlu2 %v938_v32  ;;  %891 = vset.pattern.permute.xlu1 %v936_v0 }
  0x55   :  { %406 = vperm.xlu2 %892, %v41_v25   ;;  %206 = vperm.xlu1 %891, %v40_v31  }
  0x5b   :  { %191 = vperm.xlu0 %886, %v37_v33  }
  0x5c   :  { %v82_v34 = vpop.permute.xlu2 %81 }
  0x5d   :  { %894 = vset.pattern.permute.xlu2 %v937_v29  ;;  %893 = vset.pattern.permute.xlu1 %v937_v29 }
  0x5e   :  { %305 = vperm.xlu2 %894, %v40_v31   ;;  %301 = vperm.xlu1 %893, %v39_v30  }
  0x63   :  { %907 = vset.pattern.permute.xlu0 %v939_v36 }
  0x64   :  { %491 = vperm.xlu0 %907, %v38_v35   ;;  %v1116_v37 = vpop.permute.xlu2 %86 }
  0x66   :  { %896 = vset.pattern.permute.xlu2 %v939_v36  ;;  %895 = vset.pattern.permute.xlu1 %v939_v36 }
  0x67   :  { %507 = vperm.xlu2 %896, %v42_v28   ;;  %503 = vperm.xlu1 %895, %v41_v25  }
  0x6c   :  { %479 = vperm.xlu0 %907, %v1085_v26   ;;  %v1121_v38 = vpop.permute.xlu2 %101 }
  0x6f   :  { %898 = vset.pattern.permute.xlu2 %v938_v32  ;;  %897 = vset.pattern.permute.xlu1 %v936_v0 }
  0x70   :  { %398 = vperm.xlu2 %898, %v39_v30   ;;  %196 = vperm.xlu1 %897, %v38_v35  }
  0x74   :  { %912 = vset.pattern.permute.xlu0 %v938_v32  ;;  %v1126_v39 = vpop.permute.xlu2 %116 }
  0x75   :  { %v1128_v40 = vpop.permute.xlu1 %71  ;;  %v62_v41 = vpop.permute.xlu0 %61  ;;  %410 = vperm.xlu0 %912, %v42_v28  }
  0x78   :  { %900 = vset.pattern.permute.xlu2 %v937_v29  ;;  %899 = vset.pattern.permute.xlu1 %v938_v32 }
  0x79   :  { %293 = vperm.xlu2 %900, %v37_v33   ;;  %402 = vperm.xlu1 %899, %v40_v31  }
  0x7c   :  { %v1132_v42 = vpop.permute.xlu2 %131 }
  0x7d   :  { %v77_v43 = vpop.permute.xlu1 %76  ;;  %v67_v44 = vpop.permute.xlu0 %66  ;;  %378 = vperm.xlu0 %912, %v1064_v22  }
  0x81   :  { %902 = vset.pattern.permute.xlu2 %v939_v36  ;;  %901 = vset.pattern.permute.xlu1 %v939_v36 }
  0x82   :  { %499 = vperm.xlu2 %902, %v40_v31   ;;  %495 = vperm.xlu1 %901, %v39_v30  }
  0x84   :  { %v147_v47 = vpop.permute.xlu2 %146 }
  0x85   :  { %v97_v48 = vpop.permute.xlu1 %96  ;;  %v92_v49 = vpop.permute.xlu0 %91  ;;  %366 = vperm.xlu0 %912, %v1046_v19   ;;  %v221_v50 = vmul.f32 %v1143_v46, %v147_v47  ;;  %v1233_v47 = vperm.slane %v1138_v45, 1 }
  0x87   :  { %v1147_v51 = vadd.f32 %v221_v50, %v67_v44 }
  0x8a   :  { %904 = vset.pattern.permute.xlu2 %v938_v32  ;;  %903 = vset.pattern.permute.xlu1 %v938_v32 }
  0x8b   :  { %394 = vperm.xlu2 %904, %v38_v35   ;;  %390 = vperm.xlu1 %903, %v37_v33  }
  0x8c   :  { %v162_v52 = vpop.permute.xlu2 %161 }
  0x8d   :  { %v1151_v53 = vpop.permute.xlu1 %111  ;;  %v107_v54 = vpop.permute.xlu0 %106  ;;  %919 = vset.pattern.permute.xlu0 %v937_v29  ;;  %v224_v55 = vmul.f32 %v1143_v46, %v162_v52 }
  0x8e   :  { %297 = vperm.xlu0 %919, %v38_v35  }
  0x8f   :  { %v1155_v56 = vadd.f32 %v224_v55, %v82_v34  ;;  %v1249_v55 = vperm.slane %v1138_v45, 3 }
  0x93   :  { %906 = vset.pattern.permute.xlu2 %v939_v36  ;;  %905 = vset.pattern.permute.xlu1 %v937_v29 }
  0x94   :  { %487 = vperm.xlu2 %906, %v37_v33   ;;  %289 = vperm.xlu1 %905, %v1090_v27   ;;  %v177_v57 = vpop.permute.xlu2 %176 }
  0x95   :  { %v1160_v58 = vpop.permute.xlu1 %126  ;;  %v1162_v59 = vpop.permute.xlu0 %121  ;;  %v227_v60 = vmul.f32 %v1143_v46, %v177_v57 }
  0x96   :  { %285 = vperm.xlu0 %919, %v1085_v26  }
  0x97   :  { %v1166_v61 = vadd.f32 %v227_v60, %v97_v48 }
  0x9c   :  { %909 = vset.pattern.permute.xlu2 %v938_v32  ;;  %908 = vset.pattern.permute.xlu1 %v938_v32  ;;  %v1174_v1 = vpop.permute.xlu2 %211 }
  0x9d   :  { %v1170_v62 = vpop.permute.xlu0 %136  ;;  %386 = vperm.xlu2 %909, %v1090_v27   ;;  %382 = vperm.xlu1 %908, %v1085_v26   ;;  %v142_v63 = vpop.permute.xlu1 %141 }
  0x9e   :  { %v220_v2 = vmul.f32 %v1143_v46, %v142_v63  ;;  %265 = vperm.xlu0 %919, %v1056_v21  }
  0xa0   :  { %v1178_v3 = vadd.f32 %v220_v2, %v62_v41 }
  0xa5   :  { %v152_v4 = vpop.permute.xlu0 %151  ;;  %911 = vset.pattern.permute.xlu2 %v937_v29  ;;  %910 = vset.pattern.permute.xlu1 %v937_v29  ;;  %v157_v5 = vpop.permute.xlu1 %156 }
  0xa6   :  { %v222_v6 = vmul.f32 %v1143_v46, %v152_v4  ;;  %v223_v7 = vmul.f32 %v1143_v46, %v157_v5  ;;  %281 = vperm.xlu2 %911, %v1064_v22   ;;  %253 = vperm.xlu0 %919, %v1039_v18   ;;  %v314_v8 = vpop.permute.xlu2 %313 }
  0xa7   :  { %277 = vperm.xlu1 %910, %v1074_v24   ;;  %v332_v57 = vmul.f32 %v1233_v47, %v314_v8 }
  0xa8   :  { %v1188_v9 = vadd.f32 %v222_v6, %v1128_v40  ;;  %v1190_v10 = vadd.f32 %v223_v7, %v77_v43 }
  0xad   :  { %v1192_v11 = vpop.permute.xlu0 %166  ;;  %v172_v12 = vpop.permute.xlu1 %171 }
  0xae   :  { %v226_v13 = vmul.f32 %v1143_v46, %v172_v12  ;;  %914 = vset.pattern.permute.xlu2 %v938_v32  ;;  %928 = vset.pattern.permute.xlu0 %v939_v36 }
  0xaf   :  { %913 = vset.pattern.permute.xlu1 %v939_v36  ;;  %374 = vperm.xlu2 %914, %v1074_v24   ;;  %v407_v14 = vpop.permute.xlu2 %406 }
  0xb0   :  { %v1199_v15 = vadd.f32 %v226_v13, %v92_v49  ;;  %483 = vperm.xlu1 %913, %v1090_v27   ;;  %459 = vperm.xlu0 %928, %v1056_v21  }
  0xb5   :  { %v1203_v17 = vpop.permute.xlu0 %181  ;;  %v187_v25 = vpop.permute.xlu1 %186 }
  0xb6   :  { %v229_v26 = vmul.f32 %v1143_v46, %v187_v25 }
  0xb7   :  { %916 = vset.pattern.permute.xlu2 %v937_v29 }
  0xb8   :  { %v1207_v28 = vadd.f32 %v229_v26, %v107_v54  ;;  %915 = vset.pattern.permute.xlu1 %v937_v29  ;;  %273 = vperm.xlu2 %916, %v1069_v23   ;;  %v306_v30 = vpop.permute.xlu2 %305 }
  0xb9   :  { %269 = vperm.xlu1 %915, %v1046_v19   ;;  %933 = vset.pattern.permute.xlu0 %v936_v0 }
  0xbd   :  { %v217_v27 = vpop.permute.xlu0 %216 }
  0xbe   :  { %v310_v31 = vpop.permute.xlu1 %309  ;;  %v235_v50 = vmul.f32 %v1143_v46, %v217_v27 }
  0xbf   :  { %v331_v52 = vmul.f32 %v1233_v47, %v310_v31 }
  0xc0   :  { %918 = vset.pattern.permute.xlu2 %v939_v36  ;;  %v251_v63 = vadd.f32 %v235_v50, %v1170_v62 }
  0xc1   :  { %917 = vset.pattern.permute.xlu1 %v939_v36  ;;  %475 = vperm.xlu2 %918, %v1064_v22   ;;  %v508_v33 = vpop.permute.xlu2 %507 }
  0xc2   :  { %471 = vperm.xlu1 %917, %v1074_v24   ;;  %v348_v6 = vadd.f32 %v332_v57, %v251_v63  ;;  %v526_v7 = vmul.f32 %v1249_v55, %v508_v33 }
  0xc5   :  { %v202_v34 = vpop.permute.xlu0 %201 }
  0xc6   :  { %v232_v13 = vmul.f32 %v1143_v46, %v202_v34 }
  0xc7   :  { %v207_v35 = vpop.permute.xlu1 %206 }
  0xc9   :  { %921 = vset.pattern.permute.xlu2 %v937_v29 }
  0xca   :  { %920 = vset.pattern.permute.xlu1 %v938_v32  ;;  %261 = vperm.xlu2 %921, %v1051_v20   ;;  %v399_v40 = vpop.permute.xlu2 %398 }
  0xcb   :  { %370 = vperm.xlu1 %920, %v1069_v23  }
  0xcd   :  { %v1221_v41 = vpop.permute.xlu0 %191 }
  0xd0   :  { %v302_v43 = vpop.permute.xlu1 %301 }
  0xd1   :  { %v329_v26 = vmul.f32 %v1233_v47, %v302_v43 }
  0xd2   :  { %923 = vset.pattern.permute.xlu2 %v939_v36 }
  0xd3   :  { %922 = vset.pattern.permute.xlu1 %v939_v36  ;;  %467 = vperm.xlu2 %923, %v1069_v23   ;;  %v1226_v22 = vpop.permute.xlu2 %293  ;;  %v234_v23 = vmul.f32 %v1143_v46, %v1174_v1 }
  0xd4   :  { %463 = vperm.xlu1 %922, %v1046_v19   ;;  %v1243_v19 = vperm.slane %v1138_v45, 2  ;;  %v233_v45 = vmul.f32 %v1143_v46, %v207_v35 }
  0xd5   :  { %v250_v54 = vadd.f32 %v234_v23, %v1132_v42 }
  0xd6   :  { %v1229_v24 = vpop.permute.xlu0 %491  ;;  %v428_v60 = vmul.f32 %v1243_v19, %v407_v14  ;;  %v426_v43 = vmul.f32 %v1243_v19, %v399_v40 }
  0xd7   :  { %v347_v1 = vadd.f32 %v331_v52, %v250_v54 }
  0xd9   :  { %v504_v44 = vpop.permute.xlu1 %503  ;;  %v444_v5 = vadd.f32 %v428_v60, %v347_v1 }
  0xda   :  { %v525_v42 = vmul.f32 %v1249_v55, %v504_v44 }
  0xdb   :  { %925 = vset.pattern.permute.xlu2 %v938_v32 }
  0xdc   :  { %924 = vset.pattern.permute.xlu1 %v938_v32  ;;  %362 = vperm.xlu2 %925, %v1056_v21   ;;  %v500_v48 = vpop.permute.xlu2 %499  ;;  %v541_v8 = vadd.f32 %v525_v42, %v444_v5 }
  0xdd   :  { %358 = vperm.xlu1 %924, %v1051_v20   ;;  %v524_v50 = vmul.f32 %v1249_v55, %v500_v48  ;;  %v230_v48 = vmul.f32 %v1143_v46, %v1221_v41 }
  0xde   :  { %v1240_v49 = vpop.permute.xlu0 %479  ;;  %v557_v31 = vmax.f32 %v541_v8, 0.0 }
  0xe2   :  { %v197_v21 = vpop.permute.xlu1 %196 }
  0xe3   :  { %v231_v5 = vmul.f32 %v1143_v46, %v197_v21 }
  0xe4   :  { %927 = vset.pattern.permute.xlu2 %v939_v36 }
  0xe5   :  { %926 = vset.pattern.permute.xlu1 %v937_v29  ;;  %v1256_v2 = vpop.permute.xlu2 %394  ;;  %455 = vperm.xlu2 %927, %v1051_v20   ;;  %v330_v29 = vmul.f32 %v1233_v47, %v306_v30  ;;  %v249_v20 = vadd.f32 %v233_v45, %v1160_v58  ;;  %v248_v30 = vadd.f32 %v232_v13, %v1162_v59 }
  0xe6   :  { %257 = vperm.xlu1 %926, %v1031_v16   ;;  %v327_v45 = vmul.f32 %v1233_v47, %v1226_v22  ;;  %v247_v41 = vadd.f32 %v231_v5, %v1126_v39  ;;  %v425_v13 = vmul.f32 %v1243_v19, %v1256_v2 }
  0xe7   :  { %v411_v4 = vpop.permute.xlu0 %410  ;;  %v346_v34 = vadd.f32 %v330_v29, %v249_v20  ;;  %v345_v23 = vadd.f32 %v329_v26, %v248_v30  ;;  %v522_v29 = vmul.f32 %v1249_v55, %v1229_v24  ;;  %v228_v30 = vmul.f32 %v1143_v46, %v1203_v17 }
  0xe8   :  { %v429_v62 = vmul.f32 %v1243_v19, %v411_v4 }
  0xe9   :  { %v442_v57 = vadd.f32 %v426_v43, %v345_v23  ;;  %v244_v2 = vadd.f32 %v228_v30, %v1121_v38 }
  0xea   :  { %v445_v12 = vadd.f32 %v429_v62, %v348_v6 }
  0xeb   :  { %v403_v14 = vpop.permute.xlu1 %402 }
  0xec   :  { %v542_v25 = vadd.f32 %v526_v7, %v445_v12  ;;  %v427_v27 = vmul.f32 %v1243_v19, %v403_v14 }
  0xed   :  { %930 = vset.pattern.permute.xlu2 %v938_v32 }
  0xee   :  { %v558_v35 = vmax.f32 %v542_v25, 0.0  ;;  %929 = vset.pattern.permute.xlu1 %v938_v32  ;;  %v488_v33 = vpop.permute.xlu2 %487  ;;  %354 = vperm.xlu2 %930, %v1031_v16   ;;  %v443_v52 = vadd.f32 %v427_v27, %v346_v34 }
  0xef   :  { %350 = vperm.xlu1 %929, %v1039_v18   ;;  %v379_v58 = vpop.permute.xlu0 %378  ;;  %v521_v62 = vmul.f32 %v1249_v55, %v488_v33 }
  0xf0   :  { %v582_v44 = vpack.c.bf16 %v558_v35, %v557_v31  ;;  %v540_v54 = vadd.f32 %v524_v50, %v443_v52  ;;  %v421_v21 = vmul.f32 %v1243_v19, %v379_v58  ;;  %v519_v58 = vmul.f32 %v1249_v55, %v1240_v49 }
  0xf2   :  { %727 = vmatpush.bf16.msra.mxu0 %v582_v44  ;;  %866 = vmatpush.bf16.msra.mxu2 %v582_v44  ;;  %v556_v1 = vmax.f32 %v540_v54, 0.0 }
  0xf3   :  { %867 = vmatpush.bf16.msra.mxu3 %v582_v44 }
  0xf4   :  { %v496_v32 = vpop.permute.xlu1 %495 }
  0xf5   :  { %v523_v60 = vmul.f32 %v1249_v55, %v496_v32 }
  0xf6   :  { %932 = vset.pattern.permute.xlu2 %v939_v36 }
  0xf7   :  { %v539_v59 = vadd.f32 %v523_v60, %v442_v57  ;;  %931 = vset.pattern.permute.xlu1 %v939_v36  ;;  %v1279_v63 = vpop.permute.xlu0 %366  ;;  %v387_v40 = vpop.permute.xlu2 %386  ;;  %451 = vperm.xlu2 %932, %v1031_v16   ;;  %v246_v36 = vadd.f32 %v230_v48, %v1151_v53 }
  0xf8   :  { %447 = vperm.xlu1 %931, %v1039_v18   ;;  %v423_v54 = vmul.f32 %v1243_v19, %v387_v40 }
  0xf9   :  { %v555_v42 = vmax.f32 %v539_v59, 0.0  ;;  %v343_v18 = vadd.f32 %v327_v45, %v246_v36  ;;  %v418_v36 = vmul.f32 %v1243_v19, %v1279_v63 }
  0xfb   :  { %v581_v4 = vpack.c.bf16 %v556_v1, %v555_v42 }
  0xfd   :  { %v391_v6 = vpop.permute.xlu1 %390  ;;  %728 = vmatpush.bf16.msra.mxu0 %v581_v4  ;;  %868 = vmatpush.bf16.msra.mxu2 %v581_v4 }
  0xfe   :  { %v424_v16 = vmul.f32 %v1243_v19, %v391_v6  ;;  %869 = vmatpush.bf16.msra.mxu3 %v581_v4 }
  0xff   :  { %935 = vset.pattern.permute.xlu2 %v936_v0 }
 0x100   :  { %v298_v7 = vpop.permute.xlu0 %297  ;;  %v282_v22 = vpop.permute.xlu2 %281  ;;  %934 = vset.pattern.permute.xlu1 %v936_v0  ;;  %v440_v53 = vadd.f32 %v424_v16, %v343_v18 }
 0x101   :  { %v328_v8 = vmul.f32 %v1233_v47, %v298_v7  ;;  %v324_v12 = vmul.f32 %v1233_v47, %v282_v22 }
 0x102   :  { %v537_v14 = vadd.f32 %v521_v62, %v440_v53 }
 0x103   :  { %v344_v39 = vadd.f32 %v328_v8, %v247_v41  ;;  %v340_v20 = vadd.f32 %v324_v12, %v1166_v61 }
 0x104   :  { %v553_v31 = vmax.f32 %v537_v14, 0.0 }
 0x105   :  { %v441_v25 = vadd.f32 %v425_v13, %v344_v39  ;;  %v437_v26 = vadd.f32 %v421_v21, %v340_v20 }
 0x106   :  { %v290_v0 = vpop.permute.xlu1 %289 }
 0x107   :  { %v538_v27 = vadd.f32 %v522_v29, %v441_v25  ;;  %v326_v17 = vmul.f32 %v1233_v47, %v290_v0 }
 0x108   :  { %v286_v35 = vpop.permute.xlu0 %285 }
 0x109   :  { %v554_v33 = vmax.f32 %v538_v27, 0.0  ;;  %v325_v24 = vmul.f32 %v1233_v47, %v286_v35  ;;  %v375_v52 = vpop.permute.xlu2 %374  ;;  %v342_v57 = vadd.f32 %v326_v17, %v1207_v28 }
 0x10a   :  { %v420_v18 = vmul.f32 %v1243_v19, %v375_v52 }
 0x10b   :  { %v580_v34 = vpack.c.bf16 %v554_v33, %v553_v31  ;;  %v341_v44 = vadd.f32 %v325_v24, %v244_v2  ;;  %v439_v59 = vadd.f32 %v423_v54, %v342_v57 }
 0x10d   :  { %729 = vmatpush.bf16.msra.mxu0 %v580_v34  ;;  %870 = vmatpush.bf16.msra.mxu2 %v580_v34 }
 0x10e   :  { %871 = vmatpush.bf16.msra.mxu3 %v580_v34 }
 0x10f   :  { %v383_v61 = vpop.permute.xlu1 %382 }
 0x110   :  { %v422_v43 = vmul.f32 %v1243_v19, %v383_v61  ;;  %v266_v12 = vpop.permute.xlu0 %265 }
 0x111   :  { %v320_v34 = vmul.f32 %v1233_v47, %v266_v12 }
 0x112   :  { %v438_v23 = vadd.f32 %v422_v43, %v341_v44  ;;  %v274_v60 = vpop.permute.xlu2 %273 }
 0x113   :  { %v322_v20 = vmul.f32 %v1233_v47, %v274_v60  ;;  %v336_v44 = vadd.f32 %v320_v34, %v1190_v10  ;;  %v862_v34 = vld [vmem:[%s1430_s3 + $0x20] sm:$0xff] }
 0x114   :  { %v535_v50 = vadd.f32 %v519_v58, %v438_v23 }
 0x116   :  { %v551_v49 = vmax.f32 %v535_v50, 0.0 }
 0x118   :  { %v254_v27 = vpop.permute.xlu0 %253 }
 0x119   :  { %v278_v32 = vpop.permute.xlu1 %277 }
 0x11a   :  { %v323_v28 = vmul.f32 %v1233_v47, %v278_v32 }
 0x11b   :  { %v476_v4 = vpop.permute.xlu2 %475 }
 0x11c   :  { %v339_v41 = vadd.f32 %v323_v28, %v1199_v15  ;;  %v518_v62 = vmul.f32 %v1249_v55, %v476_v4 }
 0x11e   :  { %v534_v22 = vadd.f32 %v518_v62, %v437_v26  ;;  %v436_v53 = vadd.f32 %v420_v18, %v339_v41  ;;  %v317_v41 = vmul.f32 %v1233_v47, %v254_v27  ;;  %v592_v27 = vld [vmem:[%s1429_s4 + $0x48] sm:$0xff] }
 0x120   :  { %v550_v29 = vmax.f32 %v534_v22, 0.0 }
 0x122   :  { %v484_v38 = vpop.permute.xlu1 %483  ;;  %v460_v61 = vpop.permute.xlu0 %459 }
 0x123   :  { %v520_v48 = vmul.f32 %v1249_v55, %v484_v38  ;;  %v514_v52 = vmul.f32 %v1249_v55, %v460_v61 }
 0x124   :  { %v262_v21 = vpop.permute.xlu2 %261 }
 0x125   :  { %v536_v1 = vadd.f32 %v520_v48, %v439_v59  ;;  %v319_v43 = vmul.f32 %v1233_v47, %v262_v21  ;;  %v589_v21 = vld [vmem:[%s1429_s4 + $0x30] sm:$0xff] }
 0x127   :  { %v552_v42 = vmax.f32 %v536_v1, 0.0  ;;  %v335_v54 = vadd.f32 %v319_v43, %v1188_v9 }
 0x129   :  { %v579_v45 = vpack.c.bf16 %v552_v42, %v551_v49  ;;  %v597_v49 = vld [vmem:[%s1429_s4 + $0x70] sm:$0xff]  ;;  %v598_v42 = vld [vmem:[%s1429_s4 + $0x78] sm:$0xff] }
 0x12a   :  { %671 = vperm.xlu0 %933, %v597_v49   ;;  %676 = vperm.xlu1 %934, %v598_v42  }
 0x12b   :  { %v270_v5 = vpop.permute.xlu1 %269  ;;  %730 = vmatpush.bf16.msra.mxu0 %v579_v45  ;;  %872 = vmatpush.bf16.msra.mxu2 %v579_v45 }
 0x12c   :  { %v321_v40 = vmul.f32 %v1233_v47, %v270_v5  ;;  %873 = vmatpush.bf16.msra.mxu3 %v579_v45  ;;  %v594_v5 = vld [vmem:[%s1429_s4 + $0x58] sm:$0xff] }
 0x12d   :  { %v468_v14 = vpop.permute.xlu2 %467 }
 0x12e   :  { %v337_v6 = vadd.f32 %v321_v40, %v1155_v56  ;;  %v225_v56 = vmul.f32 %v1143_v46, %v1192_v11  ;;  %v516_v31 = vmul.f32 %v1249_v55, %v468_v14  ;;  %v860_v14 = vld [vmem:[%s1430_s3 + $0x10] sm:$0xff] }
 0x130   :  { %v434_v16 = vadd.f32 %v418_v36, %v337_v6  ;;  %v241_v25 = vadd.f32 %v225_v56, %v1116_v37  ;;  %v596_v36 = vld [vmem:[%s1429_s4 + $0x68] sm:$0xff]  ;;  %v590_v56 = vld [vmem:[%s1429_s4 + $0x38] sm:$0xff] }
 0x132   :  { %v338_v0 = vadd.f32 %v322_v20, %v241_v25  ;;  %656 = vperm.xlu0 %933, %v594_v5   ;;  %666 = vperm.xlu1 %934, %v596_v36   ;;  %v593_v25 = vld [vmem:[%s1429_s4 + $0x50] sm:$0xff] }
 0x134   :  { %v472_v7 = vpop.permute.xlu1 %471 }
 0x135   :  { %v517_v63 = vmul.f32 %v1249_v55, %v472_v7 }
 0x136   :  { %v363_v30 = vpop.permute.xlu2 %362 }
 0x137   :  { %v533_v8 = vadd.f32 %v517_v63, %v436_v53  ;;  %v417_v2 = vmul.f32 %v1243_v19, %v363_v30  ;;  %v591_v53 = vld [vmem:[%s1429_s4 + $0x40] sm:$0xff]  ;;  %v864_v30 = vld [vmem:[%s1430_s3 + $0x30] sm:$0xff] }
 0x139   :  { %v549_v13 = vmax.f32 %v533_v8, 0.0  ;;  %v433_v50 = vadd.f32 %v417_v2, %v336_v44  ;;  %v801_v2 = vld [vmem:[%s1431_s6] sm:$0xff] }
 0x13a   :  { %631 = vperm.xlu0 %933, %v589_v21   ;;  %641 = vperm.xlu1 %934, %v591_v53  }
 0x13b   :  { %v578_v39 = vpack.c.bf16 %v550_v29, %v549_v13  ;;  %v530_v38 = vadd.f32 %v514_v52, %v433_v50  ;;  %v588_v13 = vld [vmem:[%s1429_s4 + $0x28] sm:$0xff] }
 0x13d   :  { %v371_v15 = vpop.permute.xlu1 %370  ;;  %731 = vmatpush.bf16.msra.mxu0 %v578_v39  ;;  %874 = vmatpush.bf16.msra.mxu2 %v578_v39  ;;  %v546_v48 = vmax.f32 %v530_v38, 0.0 }
 0x13e   :  { %875 = vmatpush.bf16.msra.mxu3 %v578_v39  ;;  %v419_v26 = vmul.f32 %v1243_v19, %v371_v15  ;;  %v863_v15 = vld [vmem:[%s1430_s3 + $0x28] sm:$0xff] }
 0x13f   :  { %v456_v32 = vpop.permute.xlu2 %455 }
 0x140   :  { %v435_v35 = vadd.f32 %v419_v26, %v338_v0  ;;  %v513_v57 = vmul.f32 %v1249_v55, %v456_v32  ;;  %v585_v26 = vld [vmem:[%s1429_s4 + $0x10] sm:$0xff]  ;;  %v583_v0 = vld [vmem:[%s1429_s4] sm:$0xff] }
 0x142   :  { %v532_v46 = vadd.f32 %v516_v31, %v435_v35  ;;  %626 = vperm.xlu0 %933, %v588_v13   ;;  %636 = vperm.xlu1 %934, %v590_v56   ;;  %v584_v31 = vld [vmem:[%s1429_s4 + $0x8] sm:$0xff]  ;;  %v861_v35 = vld [vmem:[%s1430_s3 + $0x18] sm:$0xff] }
 0x144   :  { %v548_v58 = vmax.f32 %v532_v46, 0.0  ;;  %v587_v46 = vld [vmem:[%s1429_s4 + $0x20] sm:$0xff] }
 0x146   :  { %v464_v33 = vpop.permute.xlu1 %463 }
 0x147   :  { %v515_v11 = vmul.f32 %v1249_v55, %v464_v33  ;;  %v859_v33 = vld [vmem:[%s1430_s3 + $0x8] sm:$0xff] }
 0x148   :  { %v355_v4 = vpop.permute.xlu2 %354 }
 0x149   :  { %v531_v24 = vadd.f32 %v515_v11, %v434_v16  ;;  %v415_v6 = vmul.f32 %v1243_v19, %v355_v4  ;;  %v586_v11 = vld [vmem:[%s1429_s4 + $0x18] sm:$0xff] }
 0x14a   :  { %611 = vperm.xlu1 %934, %v585_v26   ;;  %601 = vperm.xlu0 %933, %v583_v0  }
 0x14b   :  { %v547_v37 = vmax.f32 %v531_v24, 0.0  ;;  %v865_v24 = vld [vmem:[%s1430_s3 + $0x38] sm:$0xff] }
 0x14d   :  { %v577_v23 = vpack.c.bf16 %v548_v58, %v547_v37 }
 0x14f   :  { %v359_v17 = vpop.permute.xlu1 %358  ;;  %732 = vmatpush.bf16.msra.mxu0 %v577_v23  ;;  %876 = vmatpush.bf16.msra.mxu2 %v577_v23 }
 0x150   :  { %v416_v60 = vmul.f32 %v1243_v19, %v359_v17  ;;  %877 = vmatpush.bf16.msra.mxu3 %v577_v23 }
 0x151   :  { %v452_v18 = vpop.permute.xlu2 %451 }
 0x152   :  { %v432_v59 = vadd.f32 %v416_v60, %v335_v54  ;;  %v512_v7 = vmul.f32 %v1249_v55, %v452_v18  ;;  %606 = vperm.xlu1 %934, %v584_v31  }
 0x154   :  { %v529_v10 = vadd.f32 %v513_v57, %v432_v59 }
 0x156   :  { %v545_v1 = vmax.f32 %v529_v10, 0.0 }
 0x158   :  { %v258_v45 = vpop.permute.xlu1 %257  ;;  %v576_v9 = vpack.c.bf16 %v546_v48, %v545_v1 }
 0x159   :  { %v318_v40 = vmul.f32 %v1233_v47, %v258_v45  ;;  %v333_v47 = vadd.f32 %v317_v41, %v1178_v3 }
 0x15a   :  { %733 = vmatpush.bf16.msra.mxu0 %v576_v9  ;;  %878 = vmatpush.bf16.msra.mxu2 %v576_v9 }
 0x15b   :  { %879 = vmatpush.bf16.msra.mxu3 %v576_v9  ;;  %v334_v16 = vadd.f32 %v318_v40, %v1147_v51  ;;  %v595_v51 = vld [vmem:[%s1429_s4 + $0x60] sm:$0xff] }
 0x15c   :  { %661 = vperm.xlu2 %935, %v595_v51  }
 0x15d   :  { %v431_v62 = vadd.f32 %v415_v6, %v334_v16 }
 0x15f   :  { %v528_v8 = vadd.f32 %v512_v7, %v431_v62 }
 0x161   :  { %v351_v28 = vpop.permute.xlu1 %350  ;;  %v544_v39 = vmax.f32 %v528_v8, 0.0 }
 0x162   :  { %v414_v22 = vmul.f32 %v1243_v19, %v351_v28 }
 0x164   :  { %v430_v19 = vadd.f32 %v414_v22, %v333_v47  ;;  %651 = vperm.xlu2 %935, %v593_v25  }
 0x16a   :  { %v448_v63 = vpop.permute.xlu1 %447 }
 0x16b   :  { %v511_v12 = vmul.f32 %v1249_v55, %v448_v63  ;;  %v858_v55 = vld [vmem:[%s1430_s3] sm:$0xff] }
 0x16c   :  { %646 = vperm.xlu2 %935, %v592_v27  }
 0x16d   :  { %v527_v29 = vadd.f32 %v511_v12, %v430_v19 }
 0x16f   :  { %v543_v20 = vmax.f32 %v527_v29, 0.0 }
 0x171   :  { %v575_v3 = vpack.c.bf16 %v544_v39, %v543_v20 }
 0x173   :  { %734 = vmatpush.bf16.msra.mxu0 %v575_v3  ;;  %880 = vmatpush.bf16.msra.mxu2 %v575_v3 }
 0x174   :  { %881 = vmatpush.bf16.msra.mxu3 %v575_v3  ;;  %621 = vperm.xlu2 %935, %v587_v46  }
 0x176   :  { %745 = vmatmul.bf16.vlgmr.msra.gmra.mxu2 %v860_v14  ;;  %735 = vmatmul.bf16.vlgmr.msra.gmra.mxu0 %v858_v55 }
 0x177   :  { %760 = vmatmul.bf16.vlgmr.msra.gmra.mxu3 %v863_v15 }
 0x17c   :  { %616 = vperm.xlu2 %935, %v586_v11  }
 0x184   :  { %804 = vperm.xlu2 %935, %v801_v2  }
 0x186   :  { %750 = vmatmul.bf16.gmra.mxu2 %v861_v35  ;;  %740 = vmatmul.bf16.gmra.mxu0 %v859_v33 }
 0x187   :  { %765 = vmatmul.bf16.gmra.mxu3 %v864_v30 }
 0x196   :  { %755 = vmatmul.bf16.gmra.mxu2 %v862_v34 }
 0x197   :  { %770 = vmatmul.bf16.gmra.mxu3 %v865_v24 }
 0x19c   :  { %v677_v43 = vpop.permute.xlu1 %676  ;;  %v672_v17 = vpop.permute.xlu0 %671 }
 0x1a4   :  { %v667_v32 = vpop.permute.xlu1 %666  ;;  %v657_v48 = vpop.permute.xlu0 %656 }
 0x1ac   :  { %v642_v59 = vpop.permute.xlu1 %641  ;;  %v632_v40 = vpop.permute.xlu0 %631 }
 0x1b4   :  { %v637_v36 = vpop.permute.xlu1 %636  ;;  %v627_v13 = vpop.permute.xlu0 %626 }
 0x1b6   :  { %v662_v52 = vpop.permute.xlu2 %661 }
 0x1bc   :  { %v612_v29 = vpop.permute.xlu1 %611  ;;  %v602_v46 = vpop.permute.xlu0 %601 }
 0x1be   :  { %v652_v38 = vpop.permute.xlu2 %651 }
 0x1c4   :  { %v607_v24 = vpop.permute.xlu1 %606 }
 0x1c6   :  { %v647_v5 = vpop.permute.xlu2 %646 }
 0x1ce   :  { %v622_v12 = vpop.permute.xlu2 %621 }
 0x1d6   :  { %v617_v35 = vpop.permute.xlu2 %616 }
 0x1f3   :  { %v736_v60 = vpop.f32.mrf.mxu0 }
 0x1f4   :  { %v737_v2 = vadd.f32 %v736_v60, %v602_v46 }
 0x1f9   :  { %v746_v61 = vpop.f32.mrf.mxu2 }
 0x1fa   :  { %v761_v58 = vpop.f32.mrf.mxu3  ;;  %v747_v55 = vadd.f32 %v746_v61, %v622_v12 }
 0x1fb   :  { %v738_v49 = vpop.f32.mrf.mxu0  ;;  %v762_v22 = vadd.f32 %v761_v58, %v652_v38 }
 0x1fc   :  { %v780_v31 = vmax.f32 %v747_v55, 0.0 }
 0x1fd   :  { %v786_v8 = vmax.f32 %v762_v22, 0.0 }
 0x201   :  { %v748_v37 = vpop.f32.mrf.mxu2 }
 0x202   :  { %v763_v44 = vpop.f32.mrf.mxu3  ;;  %v749_v15 = vadd.f32 %v748_v37, %v627_v13  ;;  %v776_v37 = vmax.f32 %v737_v2, 0.0 }
 0x203   :  { %v764_v18 = vadd.f32 %v763_v44, %v657_v48  ;;  %v741_v53 = vpop.f32.mrf.mxu0  ;;  %v739_v44 = vadd.f32 %v738_v49, %v607_v24 }
 0x204   :  { %v781_v33 = vmax.f32 %v749_v15, 0.0  ;;  %v742_v30 = vadd.f32 %v741_v53, %v612_v29 }
 0x205   :  { %v787_v51 = vmax.f32 %v764_v18, 0.0 }
 0x206   :  { %v778_v58 = vmax.f32 %v742_v30, 0.0  ;;  %v795_v61 = vpack.c.bf16 %v781_v33, %v780_v31 }
 0x207   :  { %v798_v3 = vpack.c.bf16 %v787_v51, %v786_v8 }
 0x209   :  { %v751_v23 = vpop.f32.mrf.mxu2 }
 0x20a   :  { %v766_v50 = vpop.f32.mrf.mxu3  ;;  %v752_v56 = vadd.f32 %v751_v23, %v632_v40  ;;  %v777_v23 = vmax.f32 %v739_v44, 0.0 }
 0x20b   :  { %v767_v28 = vadd.f32 %v766_v50, %v662_v52  ;;  %v743_v27 = vpop.f32.mrf.mxu0 }
 0x20c   :  { %v782_v25 = vmax.f32 %v752_v56, 0.0  ;;  %v744_v11 = vadd.f32 %v743_v27, %v617_v35  ;;  %v793_v52 = vpack.c.bf16 %v777_v23, %v776_v37 }
 0x20d   :  { %v788_v21 = vmax.f32 %v767_v28, 0.0 }
 0x211   :  { %v753_v57 = vpop.f32.mrf.mxu2 }
 0x212   :  { %v768_v54 = vpop.f32.mrf.mxu3  ;;  %v754_v39 = vadd.f32 %v753_v57, %v637_v36 }
 0x213   :  { %v769_v9 = vadd.f32 %v768_v54, %v667_v32  ;;  %v792_v32 = vld [vmem:[%s1432_s5] sm:$0xf] }
 0x214   :  { %v783_v26 = vmax.f32 %v754_v39, 0.0 }
 0x215   :  { %v789_v41 = vmax.f32 %v769_v9, 0.0 }
 0x216   :  { %v796_v34 = vpack.c.bf16 %v783_v26, %v782_v25 }
 0x217   :  { %v799_v63 = vpack.c.bf16 %v789_v41, %v788_v21 }
 0x219   :  { %v756_v1 = vpop.f32.mrf.mxu2 }
 0x21a   :  { %v771_v10 = vpop.f32.mrf.mxu3  ;;  %v757_v19 = vadd.f32 %v756_v1, %v642_v59 }
 0x21b   :  { %v772_v42 = vadd.f32 %v771_v10, %v672_v17  ;;  %v805_v17 = vpop.permute.xlu2 %804 }
 0x21c   :  { %v784_v14 = vmax.f32 %v757_v19, 0.0 }
 0x21d   :  { %v790_v6 = vmax.f32 %v772_v42, 0.0 }
 0x221   :  { %v758_v7 = vpop.f32.mrf.mxu2 }
 0x222   :  { %v773_v45 = vpop.f32.mrf.mxu3  ;;  %v759_v47 = vadd.f32 %v758_v7, %v647_v5 }
 0x223   :  { %v774_v4 = vadd.f32 %v773_v45, %v677_v43  ;;  %v779_v43 = vmax.f32 %v744_v11, 0.0 }
 0x224   :  { %v785_v20 = vmax.f32 %v759_v47, 0.0 }
 0x225   :  { %v791_v16 = vmax.f32 %v774_v4, 0.0  ;;  %v794_v50 = vpack.c.bf16 %v779_v43, %v778_v58 }
 0x226   :  { %v797_v0 = vpack.c.bf16 %v785_v20, %v784_v14 }
 0x227   :  { %v800_v62 = vpack.c.bf16 %v791_v16, %v790_v6 }
 0x229   :  { %807 = vmatpush.bf16.msra.mxu1 %v800_v62 }
 0x22d   :  { %808 = vmatpush.bf16.msra.mxu1 %v799_v63 }
 0x231   :  { %809 = vmatpush.bf16.msra.mxu1 %v798_v3 }
 0x235   :  { %810 = vmatpush.bf16.msra.mxu1 %v797_v0 }
 0x239   :  { %811 = vmatpush.bf16.msra.mxu1 %v796_v34 }
 0x23d   :  { %812 = vmatpush.bf16.msra.mxu1 %v795_v61 }
 0x241   :  { %813 = vmatpush.bf16.msra.mxu1 %v794_v50 }
 0x245   :  { %814 = vmatpush.bf16.msra.mxu1 %v793_v52 }
 0x248   :  { %815 = vmatmul.bf16.vlgmr.msra.gmra.mxu1 %v792_v32 }
 0x2c5   :  { %v816_v54 = vpop.f32.mrf.mxu1 }
 0x2c6   :  { %v817_v57 = vadd.f32 %v816_v54, %v805_v17 }
 0x2c8   :  { %821 = vst.msk [vmem:[%s1433_s7] sm:$0xff] %vm820_vm0, %v817_v57 }
 0x2cd   :  { %v818_v60 = vpop.f32.mrf.mxu1 }

</bundles_post_ra>
